<compile_context>
chip_gen: v5e
topology: v5e:2x2
jax: 0.10.0
libtpu: 0.0.40
codegen_flags: <defaults>
</compile_context>

<pallas_src>
import functools

import jax
import jax.numpy as jnp
from jax.experimental import pallas as pl
from jax.experimental.pallas import tpu as pltpu


def _rpn_head_kernel(x_ref, wc_ref, bc_ref, wb_ref, bb_ref,
                     cls_ref, bbox_ref):
    """Fused 1x1-conv heads on one pixel tile; pixels live on the lane axis.

    x_ref   : (C, T)   activation tile (f32 or bf16; cast to compute dtype here)
    wc_ref  : (A, C)   bf16 cls weights      bc_ref : (A, 1)   f32 bias
    wb_ref  : (4A, C)  bf16 bbox weights     bb_ref : (4A, 1)  f32 bias
    cls_ref : (A, T)   f32 output tile
    bbox_ref: (4A, T)  f32 output tile
    """
    # In-kernel cast: the f32 input is read from HBM once; the cast is a
    # trivial VPU op hidden under the tile DMA.
    x = x_ref[...].astype(wc_ref.dtype)
    cls = jnp.dot(wc_ref[...], x, preferred_element_type=jnp.float32)
    bbox = jnp.dot(wb_ref[...], x, preferred_element_type=jnp.float32)
    cls_ref[...] = (cls + bc_ref[...]).astype(cls_ref.dtype)
    bbox_ref[...] = (bbox + bb_ref[...]).astype(bbox_ref.dtype)


def _pick_tile_hw(hw, n, max_tile):
    """Pixel-tile length: full extent for small levels, 128-aligned otherwise.

    - hw <= max_tile and batch >= 2 (or hw too small to split): one block.
    - hw <= max_tile and batch == 1: split into 2 tiles so both v7x TCs work.
    - hw  > max_tile: balance tiles so the ragged tail block is nearly full.
    """
    if hw <= max_tile:
        if n >= 2 or hw < 256:
            return hw                      # single full-extent block per image
        n_tiles = 2                        # keep both v7x TensorCores busy
    else:
        n_tiles = -(-hw // max_tile)
    tile = -(-hw // n_tiles)               # balanced tile size
    tile = ((tile + 127) // 128) * 128     # partial last blocks need 128-align
    return min(tile, hw)


@functools.partial(jax.jit, static_argnames=("num_anchors", "tile_hw"))
def _forward_one_level(y, w_cls, b_cls, w_bbox, b_bbox, *, num_anchors,
                       tile_hw):
    """y: (N, C, H, W) -> (logits (N, A, H, W), bbox (N, 4A, H, W)), f32."""
    N, C, H, W = y.shape
    HW = H * W
    A = num_anchors

    # NCHW -> (N, C, HW) is a contiguous reshape (no transpose / no copy).
    x = y.reshape(N, C, HW)

    grid = (N, pl.cdiv(HW, tile_hw))

    cls_flat, bbox_flat = pl.pallas_call(
        _rpn_head_kernel,
        out_shape=(
            jax.ShapeDtypeStruct((N, A, HW), jnp.float32),
            jax.ShapeDtypeStruct((N, 4 * A, HW), jnp.float32),
        ),
        grid=grid,
        in_specs=[
            # Batch dim squeezed; channels full; pixel tile on lanes.
            pl.BlockSpec((None, C, tile_hw), lambda n, t: (n, 0, t)),
            pl.BlockSpec((A, C), lambda n, t: (0, 0)),        # resident weights
            pl.BlockSpec((A, 1), lambda n, t: (0, 0)),        # resident bias
            pl.BlockSpec((4 * A, C), lambda n, t: (0, 0)),
            pl.BlockSpec((4 * A, 1), lambda n, t: (0, 0)),
        ],
        out_specs=(
            pl.BlockSpec((None, A, tile_hw), lambda n, t: (n, 0, t)),
            pl.BlockSpec((None, 4 * A, tile_hw), lambda n, t: (n, 0, t)),
        ),
        compiler_params=pltpu.CompilerParams(
            dimension_semantics=("parallel", "parallel"),
            # 8K-pixel f32 input tiles double-buffered (~16 MiB at C=256) plus
            # output blocks fit comfortably; stays inside v7x's 64 MiB VMEM.
            vmem_limit_bytes=48 * 1024 * 1024,
        ),
    )(x, w_cls, b_cls, w_bbox, b_bbox)

    return (cls_flat.reshape(N, A, H, W),
            bbox_flat.reshape(N, 4 * A, H, W))


class RPNHeadConvRegressorPallas:
    """JAX/Pallas equivalent of maskrcnn_benchmark RPNHeadConvRegressor."""

    # Default max pixel tile (sweep 4096-16384).  Capped at 8K so the
    # double-buffered f32 input blocks stay trivial under v7x's 64 MiB VMEM;
    # v5e/v6e (128 MiB) could go larger but 8K already amortizes the
    # ~0.35 us/step overhead to the noise floor.
    DEFAULT_TILE_HW = 8192

    def __init__(self, in_channels, num_anchors, key,
                 compute_dtype=jnp.bfloat16):
        kc, kb = jax.random.split(key)
        self.in_channels = in_channels
        self.num_anchors = num_anchors
        self.compute_dtype = compute_dtype

        # PyTorch Conv2d(kernel_size=1) weights are (out_ch, in_ch, 1, 1):
        # normal(std=0.01), bias zero.  Keep f32 masters.
        self.w_cls = 0.01 * jax.random.normal(
            kc, (num_anchors, in_channels), jnp.float32)             # (A, C)
        self.w_bbox = 0.01 * jax.random.normal(
            kb, (num_anchors * 4, in_channels), jnp.float32)         # (4A, C)
        self.b_cls = jnp.zeros((num_anchors,), jnp.float32)          # (A,)
        self.b_bbox = jnp.zeros((num_anchors * 4,), jnp.float32)     # (4A,)

        # Kernel-side operands: bf16 weights (MXU), f32 column biases.
        self.w_cls_k = self.w_cls.astype(compute_dtype)
        self.w_bbox_k = self.w_bbox.astype(compute_dtype)
        self.b_cls_k = self.b_cls[:, None]
        self.b_bbox_k = self.b_bbox[:, None]

    def _apply_one(self, y):
        N, C, H, W = y.shape
        tile_hw = _pick_tile_hw(H * W, N, self.DEFAULT_TILE_HW)
        return _forward_one_level(
            y, self.w_cls_k, self.b_cls_k, self.w_bbox_k, self.b_bbox_k,
            num_anchors=self.num_anchors, tile_hw=tile_hw)

    def __call__(self, x):
        assert isinstance(x, (list, tuple))
        # TODO(synk): fuse all levels into one pallas_call (scalar-prefetched
        # offsets + pl.ANY refs) to amortize dispatch on tiny FPN levels.
        outs = [self._apply_one(y) for y in x]
        logits = [o[0] for o in outs]
        bbox_reg = [o[1] for o in outs]
        return (logits, bbox_reg)


def _reference(x_list, w_cls, b_cls, w_bbox, b_bbox, compute_dtype):
    """Plain-JAX reference using the same compute precision as the kernel."""
    logits, bbox = [], []
    for y in x_list:
        yc = y.astype(compute_dtype)
        wc = w_cls.astype(compute_dtype)
        wb = w_bbox.astype(compute_dtype)
        lc = jnp.einsum('nchw,ac->nahw', yc, wc,
                        preferred_element_type=jnp.float32)
        lb = jnp.einsum('nchw,ac->nahw', yc, wb,
                        preferred_element_type=jnp.float32)
        logits.append(lc + b_cls[None, :, None, None])
        bbox.append(lb + b_bbox[None, :, None, None])
    return logits, bbox


if __name__ == "__main__":
    key = jax.random.PRNGKey(0)
    k_params, k_x0, k_x1 = jax.random.split(key, 3)

    in_channels = 4
    num_anchors = 3
    head = RPNHeadConvRegressorPallas(in_channels, num_anchors, k_params)

    # Feature-map list (forward expects a list/tuple), NCHW.
    x = [
        jax.random.normal(k_x0, (2, in_channels, 16, 16), jnp.float32),
        jax.random.normal(k_x1, (2, in_channels, 8, 8), jnp.float32),
    ]

    logits, bbox_reg = head(x)
    jax.block_until_ready(logits)
    jax.block_until_ready(bbox_reg)

    # Sanity check against a pure-JAX reference (same bf16 compute precision).
    ref_logits, ref_bbox = _reference(
        x, head.w_cls, head.b_cls, head.w_bbox, head.b_bbox,
        head.compute_dtype)
    for got, ref in zip(logits + bbox_reg, ref_logits + ref_bbox):
        assert got.shape == ref.shape, (got.shape, ref.shape)
        assert got.dtype == jnp.float32
        err = jnp.max(jnp.abs(got - ref))
        assert err < 2e-3, float(err)

    print("KERNEL_OK")
</pallas_src>

<mosaic_0001>
module attributes {stable_mosaic.version = 11 : i64} {
  func.func @_rpn_head_kernel(%arg0: i32, %arg1: i32, %arg2: memref<1x4x256xf32, #tpu.memory_space<vmem>>, %arg3: memref<3x4xbf16, #tpu.memory_space<vmem>>, %arg4: memref<3x1xf32, #tpu.memory_space<vmem>>, %arg5: memref<12x4xbf16, #tpu.memory_space<vmem>>, %arg6: memref<12x1xf32, #tpu.memory_space<vmem>>, %arg7: memref<1x3x256xf32, #tpu.memory_space<vmem>>, %arg8: memref<1x12x256xf32, #tpu.memory_space<vmem>>) attributes {dimension_semantics = [#tpu.dimension_semantics<parallel>, #tpu.dimension_semantics<parallel>], iteration_bounds = array<i64: 2, 1>, scalar_prefetch = 0 : i64, scratch_operands = 0 : i64, tpu.core_type = #tpu.core_type<tc>, window_params = [{transform_indices = @transform_0, window_bounds = array<i64: 1, 4, 256>}, {pipeline_mode = #tpu.pipeline_mode<synchronous>, transform_indices = @transform_1, window_bounds = array<i64: 3, 4>}, {pipeline_mode = #tpu.pipeline_mode<synchronous>, transform_indices = @transform_2, window_bounds = array<i64: 3, 1>}, {pipeline_mode = #tpu.pipeline_mode<synchronous>, transform_indices = @transform_3, window_bounds = array<i64: 12, 4>}, {pipeline_mode = #tpu.pipeline_mode<synchronous>, transform_indices = @transform_4, window_bounds = array<i64: 12, 1>}, {transform_indices = @transform_5, window_bounds = array<i64: 1, 3, 256>}, {transform_indices = @transform_6, window_bounds = array<i64: 1, 12, 256>}]} {
    %c0 = arith.constant 0 : index
    %c0_0 = arith.constant 0 : index
    %c0_1 = arith.constant 0 : index
    %0 = vector.load %arg2[%c0, %c0_0, %c0_1] : memref<1x4x256xf32, #tpu.memory_space<vmem>>, vector<1x4x256xf32>
    %1 = vector.shape_cast %0 : vector<1x4x256xf32> to vector<4x256xf32>
    %2 = arith.truncf %1 : vector<4x256xf32> to vector<4x256xbf16>
    %c0_2 = arith.constant 0 : index
    %c0_3 = arith.constant 0 : index
    %3 = vector.load %arg3[%c0_2, %c0_3] : memref<3x4xbf16, #tpu.memory_space<vmem>>, vector<3x4xbf16>
    %cst = arith.constant dense<0.000000e+00> : vector<3x256xf32>
    %4 = tpu.matmul %3, %2, %cst {dimension_numbers = #tpu.dot_dimension_numbers<[1], [0], [0], [1], [0, 0, 1, 1], [], []>} : vector<3x4xbf16>, vector<4x256xbf16>, vector<3x256xf32> -> vector<3x256xf32>
    %c0_4 = arith.constant 0 : index
    %c0_5 = arith.constant 0 : index
    %5 = vector.load %arg5[%c0_4, %c0_5] : memref<12x4xbf16, #tpu.memory_space<vmem>>, vector<12x4xbf16>
    %cst_6 = arith.constant dense<0.000000e+00> : vector<12x256xf32>
    %6 = tpu.matmul %5, %2, %cst_6 {dimension_numbers = #tpu.dot_dimension_numbers<[1], [0], [0], [1], [0, 0, 1, 1], [], []>} : vector<12x4xbf16>, vector<4x256xbf16>, vector<12x256xf32> -> vector<12x256xf32>
    %c0_7 = arith.constant 0 : index
    %c0_8 = arith.constant 0 : index
    %7 = vector.load %arg4[%c0_7, %c0_8] : memref<3x1xf32, #tpu.memory_space<vmem>>, vector<3x1xf32>
    %8 = vector.broadcast %7 : vector<3x1xf32> to vector<3x256xf32>
    %9 = arith.addf %4, %8 : vector<3x256xf32>
    %c0_9 = arith.constant 0 : index
    %c0_10 = arith.constant 0 : index
    %c0_11 = arith.constant 0 : index
    %10 = vector.load %arg7[%c0_9, %c0_10, %c0_11] : memref<1x3x256xf32, #tpu.memory_space<vmem>>, vector<1x3x256xf32>
    %11 = vector.shape_cast %10 : vector<1x3x256xf32> to vector<3x256xf32>
    %12 = vector.shape_cast %9 : vector<3x256xf32> to vector<1x3x256xf32>
    tpu.vector_store %arg7[%c0_9, %c0_10, %c0_11], %12 {strides = array<i32>} : memref<1x3x256xf32, #tpu.memory_space<vmem>>, vector<1x3x256xf32>,
    %c0_12 = arith.constant 0 : index
    %c0_13 = arith.constant 0 : index
    %13 = vector.load %arg6[%c0_12, %c0_13] : memref<12x1xf32, #tpu.memory_space<vmem>>, vector<12x1xf32>
    %14 = vector.broadcast %13 : vector<12x1xf32> to vector<12x256xf32>
    %15 = arith.addf %6, %14 : vector<12x256xf32>
    %c0_14 = arith.constant 0 : index
    %c0_15 = arith.constant 0 : index
    %c0_16 = arith.constant 0 : index
    %16 = vector.load %arg8[%c0_14, %c0_15, %c0_16] : memref<1x12x256xf32, #tpu.memory_space<vmem>>, vector<1x12x256xf32>
    %17 = vector.shape_cast %16 : vector<1x12x256xf32> to vector<12x256xf32>
    %18 = vector.shape_cast %15 : vector<12x256xf32> to vector<1x12x256xf32>
    tpu.vector_store %arg8[%c0_14, %c0_15, %c0_16], %18 {strides = array<i32>} : memref<1x12x256xf32, #tpu.memory_space<vmem>>, vector<1x12x256xf32>,
    return
  }
  func.func @transform_0(%arg0: i32, %arg1: i32) -> (i32, i32, i32) {
    %c0_i32 = arith.constant 0 : i32
    %c0_i32_0 = arith.constant 0 : i32
    return %arg0, %c0_i32, %arg1 : i32, i32, i32
  }
  func.func @transform_1(%arg0: i32, %arg1: i32) -> (i32, i32) {
    %c0_i32 = arith.constant 0 : i32
    %c0_i32_0 = arith.constant 0 : i32
    %c0_i32_1 = arith.constant 0 : i32
    return %c0_i32, %c0_i32_0 : i32, i32
  }
  func.func @transform_2(%arg0: i32, %arg1: i32) -> (i32, i32) {
    %c0_i32 = arith.constant 0 : i32
    %c0_i32_0 = arith.constant 0 : i32
    %c0_i32_1 = arith.constant 0 : i32
    return %c0_i32, %c0_i32_0 : i32, i32
  }
  func.func @transform_3(%arg0: i32, %arg1: i32) -> (i32, i32) {
    %c0_i32 = arith.constant 0 : i32
    %c0_i32_0 = arith.constant 0 : i32
    %c0_i32_1 = arith.constant 0 : i32
    return %c0_i32, %c0_i32_0 : i32, i32
  }
  func.func @transform_4(%arg0: i32, %arg1: i32) -> (i32, i32) {
    %c0_i32 = arith.constant 0 : i32
    %c0_i32_0 = arith.constant 0 : i32
    %c0_i32_1 = arith.constant 0 : i32
    return %c0_i32, %c0_i32_0 : i32, i32
  }
  func.func @transform_5(%arg0: i32, %arg1: i32) -> (i32, i32, i32) {
    %c0_i32 = arith.constant 0 : i32
    %c0_i32_0 = arith.constant 0 : i32
    return %arg0, %c0_i32, %arg1 : i32, i32, i32
  }
  func.func @transform_6(%arg0: i32, %arg1: i32) -> (i32, i32, i32) {
    %c0_i32 = arith.constant 0 : i32
    %c0_i32_0 = arith.constant 0 : i32
    return %arg0, %c0_i32, %arg1 : i32, i32, i32
  }
}

</mosaic_0001>

<bundles_post_ra>
// kernel: _forward_one_level.1
= control target key start
LH: loop header
LB: loop body
LE: loop exit
PB: predicated region body
PF: predicated region fallthrough
CT: control target
= control target key end

     0   :  { %s679_s21 = smov 0   ;;  %s681_s22 = smov 0   ;;  %s741_s0 = inlined_call_operand.vmem [shape: f32[2,4,256], index: 0, kind: input, shape index: {}]   ;;  %s742_s1 = inlined_call_operand.vmem [shape: bf16[3,4], index: 1, kind: input, shape index: {}]   ;;  %s743_s2 = inlined_call_operand.vmem [shape: f32[3,1], index: 2, kind: input, shape index: {}]   ;;  %s744_s3 = inlined_call_operand.vmem [shape: bf16[12,4], index: 3, kind: input, shape index: {}]   ;;  %s745_s4 = inlined_call_operand.vmem [shape: f32[12,1], index: 4, kind: input, shape index: {}]   ;;  %s746_s5 = inlined_call_operand.vmem [shape: f32[2,3,256], index: 5, kind: output, shape index: {0}]   ;;  %s747_s6 = inlined_call_operand.vmem [shape: f32[2,12,256], index: 6, kind: output, shape index: {1}]  }
   0x1   :  { %s683_s23 = smov 0  }
   0x2 LB: > { %s29_s24 = sadd.s32 1, %s637_s22  ;;  %p571_p0 = scmp.ge.s32.totalorder %s641_s23, 1  ;;  %s641_s23 = sphi %s683_s23, %s17_s23   ;;  %s637_s22 = sphi %s681_s22, %s749_s22   ;;  %s633_s21 = sphi %s679_s21, %s748_s21  }
   0x3   : > { %p31_p1 = scmp.ge.s32.totalorder %s29_s24, 2  ;;  %p238_p2 = scmp.lt.s32.totalorder %s641_s23, 3 }
   0x5   : > { %s751_s24 = smov (%p31_p1, %s29_s24), 0  ;;  %p239_p3 = pnand %p571_p0, %p238_p2 }
   0x6   : > { %p286_p4 = scmp.lt.s32.totalorder (!%p239_p3), %s633_s21, 1 }
   0x7   : > { %242 = sbr.rel (%p239_p3) target bundleno = 174 (0xae), region = 40 }
   0xc   : > { %v328_v0 = vld [vmem:[%s743_s2] sm:$0x7]  ;;  %s753_s21 = smov (!%p286_p4, %s633_s21), 1  ;;  %v643_v1 = vmov 0   ;;  %v379_v2 = vld [vmem:[%s745_s4 + $0x8] sm:$0xf] }
   0xd   : > { %617 = vset.pattern.permute.xlu0 %v643_v1  ;;  %618 = vset.pattern.permute.xlu1 %v643_v1  ;;  %s588_s29 = sshll.u32 %s753_s21, 3  ;;  %v378_v4 = vld [vmem:[%s745_s4] sm:$0xff]  ;;  %vm338_vm0 = vcmask 1041408   ;;  %vm334_vm1 = vcmask 31744   ;;  %vm374_vm2 = vcmask 1043456   ;;  %s590_s17 = sshll.u32 %s753_s21, 5 }
   0xe   : > { %331 = vperm.xlu0 %617, %v328_v0   ;;  %387 = vperm.xlu1 %618, %v379_v2   ;;  %s293_s8 = scalar_lea.vmem %s741_s0, %s588_s29  ;;  %v582_v5 = vld [vmem:[%s744_s3] sm:$0xf]  ;;  %v591_v6 = vld [vmem:[%s744_s3] sm:$0x30]  ;;  %s303_s20 = scalar_lea.vmem %s746_s5, %s588_s29 }
   0xf   : > { %v316_v3 = vld [vmem:[%s293_s8] sm:$0xff]  ;;  %v583_v13 = vor.u32 %v591_v6, %v582_v5  ;;  %s313_s27 = scalar_lea.vmem %s747_s6, %s590_s17 }
  0x10   : > { %318 = vst [vmem:[#allocation1] ss:$2 sm:$0xff] %v316_v3  ;;  %v325_v14 = vld [vmem:[%s742_s1] sm:$0x3] }
  0x16   : > { %382 = vperm.xlu0 %617, %v378_v4  }
  0x17   : > { %v319_v7 = vld.sshfl [vmem:[#allocation1] sm:$0xff pattern:$0x75316420]  ;;  %v320_v8 = vld.sshfl [vmem:[#allocation1 + $0x8] sm:$0xff pattern:$0x75316420] }
  0x18   : > { %v323_v9 = vpack.c.bf16 %v319_v7, %v319_v7  ;;  %v324_v10 = vpack.c.bf16 %v320_v8, %v320_v8 }
  0x1a   : > { %v340_v11 = vsel %vm338_vm0, %v323_v9, 0  ;;  %v343_v12 = vsel %vm338_vm0, %v324_v10, 0 }
  0x1b   : > { %405 = vmatpush.bf16.msra.mxu2 %v340_v11  ;;  %419 = vmatpush.bf16.msra.mxu3 %v343_v12 }
  0x1c   : > { %352 = vmatpush.bf16.msra.mxu0 %v340_v11  ;;  %365 = vmatpush.bf16.msra.mxu1 %v343_v12 }
  0x1e   : > { %584 = vmatmul.msk.bf16.vlgmr.msra.gmra.mxu2 %vm334_vm1, %v583_v13  ;;  %585 = vmatmul.msk.bf16.vlgmr.msra.gmra.mxu3 %vm334_vm1, %v583_v13 }
  0x1f   : > { %578 = vmatmul.msk.bf16.vlgmr.msra.gmra.mxu0 %vm334_vm1, %v325_v14  ;;  %579 = vmatmul.msk.bf16.vlgmr.msra.gmra.mxu1 %vm334_vm1, %v325_v14 }
  0x80   : > { %v332_v15 = vpop.permute.xlu0 %331  ;;  %v388_v29 = vpop.permute.xlu1 %387 }
  0x88   : > { %v383_v21 = vpop.permute.xlu0 %382 }
  0x9c   : > { %v354_v16 = vpop.f32.mrf.mxu0  ;;  %v367_v17 = vpop.f32.mrf.mxu1 }
  0x9d   : > { %v355_v18 = vadd.f32 %v354_v16, %v332_v15  ;;  %v368_v19 = vadd.f32 %v367_v17, %v332_v15 }
  0x9f   : > { %v373_v20 = vrot.slane %v368_v19, 4 }
  0xa1   : > { %v375_v22 = vsel %vm374_vm2, %v355_v18, %v373_v20  ;;  %v407_v23 = vpop.f32.mrf.mxu2  ;;  %v421_v24 = vpop.f32.mrf.mxu3 }
  0xa2   : > { %377 = vst [vmem:[%s303_s20] sm:$0x77] %v375_v22  ;;  %v408_v25 = vadd.f32 %v407_v23, %v383_v21  ;;  %v422_v26 = vadd.f32 %v421_v24, %v383_v21 }
  0xa4   : > { %426 = vst [vmem:[%s313_s27] sm:$0xff] %v408_v25  ;;  %v356_v27 = vpop.f32.mrf.mxu0  ;;  %v369_v28 = vpop.f32.mrf.mxu1 }
  0xa5   : > { %427 = vst [vmem:[%s313_s27 + $0x8] sm:$0xff] %v422_v26 }
  0xa9   : > { %v409_v30 = vpop.f32.mrf.mxu2  ;;  %v423_v31 = vpop.f32.mrf.mxu3 }
  0xaa   : > { %v410_v32 = vadd.f32 %v409_v30, %v388_v29  ;;  %v424_v33 = vadd.f32 %v423_v31, %v388_v29 }
  0xac   : > { %428 = vst [vmem:[%s313_s27 + $0x10] sm:$0xf] %v410_v32 }
  0xad   : > { %429 = vst [vmem:[%s313_s27 + $0x18] sm:$0xf] %v424_v33 }
  0xae PF: > { %s17_s23 = sadd.s32 1, %s641_s23   ;;  %s748_s21 = smov %s637_s22 }
  0xaf   : > { %p14_p5 = scmp.ge.s32.totalorder %s17_s23, 4   ;;  %s749_s22 = smov %s751_s24 }
  0xb1   :  { %16 = sbr.rel (!%p14_p5) target bundleno = 2 (0x2), region = 82 }

</bundles_post_ra>
